<compile_context>
chip_gen: v6e
topology: v6e:2x2x1
jax: 0.10.0
libtpu: 0.0.40
codegen_flags: <defaults>
</compile_context>

<pallas_src>
import functools
import math

import jax
import jax.numpy as jnp
from jax.experimental import pallas as pl
from jax.experimental.pallas import tpu as pltpu


def _round_up(a: int, b: int) -> int:
    return ((a + b - 1) // b) * b


def _positive_linear_kernel(x_ref, wt_ref, o_ref, acc_ref, wexp_ref, *, tk):
    # Grid = (n_tiles, m_tiles, k_tiles); K (reduction) innermost.
    i = pl.program_id(1)            # batch (M) tile index
    k = pl.program_id(2)            # contraction (K) tile index
    nk = pl.num_programs(2)

    # Zero the f32 accumulator at the start of each K reduction.
    @pl.when(k == 0)
    def _():
        acc_ref[...] = jnp.zeros_like(acc_ref)

    koff = pl.multiple_of(k * tk, tk)

    # exp(W) tile: f32 exp on the EUP, cast to bf16, cached in VMEM on the first
    # batch tile of this output-column tile; reused for all remaining batch
    # tiles.  (The wt tile is still streamed by BlockSpec for i > 0 but goes
    # unread -- that DMA overlaps with MXU work.)
    @pl.when(i == 0)
    def _():
        wexp_ref[pl.ds(koff, tk), :] = jnp.exp(
            wt_ref[...].astype(jnp.float32)
        ).astype(jnp.bfloat16)

    # bf16 MXU operands, f32 accumulation.
    x_bf16 = x_ref[...].astype(jnp.bfloat16)
    w_bf16 = wexp_ref[pl.ds(koff, tk), :]
    acc_ref[...] += jnp.dot(x_bf16, w_bf16, preferred_element_type=jnp.float32)

    # Write back the finished (tm, tn) output tile after the last K step.
    @pl.when(k == nk - 1)
    def _():
        o_ref[...] = acc_ref[...].astype(o_ref.dtype)


def positive_linear(x: jax.Array, weight: jax.Array, *, tm=None, tn=None, tk=None):
    """y = x @ exp(weight).T  (PositiveLinear forward; weight is (out, in))."""
    *lead, K = x.shape
    N, Kw = weight.shape
    assert K == Kw, (K, Kw)

    x2d = x.reshape(-1, K)
    M = x2d.shape[0]

    # Pre-transpose the weight once in HBM -> (K, N): plain NN matmul in-kernel.
    wt = weight.T

    # MXU/lane-friendly tiles (sublane multiple of 8, lane multiple of 128),
    # clamped for small problems.
    tm = tm if tm is not None else min(256, _round_up(M, 8))
    tn = tn if tn is not None else min(256, _round_up(N, 128))
    tk = tk if tk is not None else min(512, _round_up(K, 128))

    M_pad, N_pad, K_pad = _round_up(M, tm), _round_up(N, tn), _round_up(K, tk)

    if (M_pad, K_pad) != (M, K):
        x2d = jnp.pad(x2d, ((0, M_pad - M), (0, K_pad - K)))
    if (K_pad, N_pad) != (K, N):
        wt = jnp.pad(wt, ((0, K_pad - K), (0, N_pad - N)))

    grid = (N_pad // tn, M_pad // tm, K_pad // tk)

    # Rough VMEM budget: double-buffered x/wt/out tiles + f32 acc + bf16 exp(W) cache.
    vmem_bytes = (2 * (tm * tk + tk * tn + tm * tn) * 4
                  + tm * tn * 4
                  + K_pad * tn * 2)
    vmem_limit = int(min(64 * 1024 * 1024, max(2 * vmem_bytes, 16 * 1024 * 1024)))

    cost = pl.CostEstimate(
        flops=2 * M * K * N,
        transcendentals=K * N,
        bytes_accessed=(x2d.dtype.itemsize * M * K
                        + wt.dtype.itemsize * K * N
                        + x.dtype.itemsize * M * N),
    )

    out = pl.pallas_call(
        functools.partial(_positive_linear_kernel, tk=tk),
        out_shape=jax.ShapeDtypeStruct((M_pad, N_pad), x.dtype),
        grid_spec=pltpu.PrefetchScalarGridSpec(
            num_scalar_prefetch=0,
            grid=grid,
            in_specs=[
                pl.BlockSpec((tm, tk), lambda j, i, k: (i, k)),   # x tile
                pl.BlockSpec((tk, tn), lambda j, i, k: (k, j)),   # W^T tile
            ],
            out_specs=pl.BlockSpec((tm, tn), lambda j, i, k: (i, j)),
            scratch_shapes=[
                pltpu.VMEM((tm, tn), jnp.float32),       # f32 accumulator
                pltpu.VMEM((K_pad, tn), jnp.bfloat16),   # cached exp(W^T) column slab
            ],
        ),
        compiler_params=pltpu.CompilerParams(
            dimension_semantics=("parallel", "arbitrary", "arbitrary"),
            vmem_limit_bytes=vmem_limit,
        ),
        cost_estimate=cost,
    )(x2d, wt)

    out = out[:M, :N]
    return out.reshape(*lead, N)


def xavier_uniform(key, out_features, in_features, dtype=jnp.float32):
    # Matches torch.nn.init.xavier_uniform_ (gain=1): bound = sqrt(6/(fan_in+fan_out))
    bound = math.sqrt(6.0 / (in_features + out_features))
    return jax.random.uniform(key, (out_features, in_features), dtype=dtype,
                              minval=-bound, maxval=bound)


if __name__ == "__main__":
    key = jax.random.PRNGKey(0)
    k_x, k_w, k_x2, k_w2 = jax.random.split(key, 4)

    # Small shapes consistent with the module.
    batch, in_features, out_features = 8, 32, 16
    x = jax.random.normal(k_x, (batch, in_features), dtype=jnp.float32)
    w = xavier_uniform(k_w, out_features, in_features)

    y = jax.block_until_ready(positive_linear(x, w))
    y_ref = x @ jnp.exp(w).T
    assert y.shape == (batch, out_features)
    err = jnp.max(jnp.abs(y - y_ref)) / (jnp.max(jnp.abs(y_ref)) + 1e-6)
    assert err < 2e-2, f"small-shape mismatch: rel err {err}"

    # Larger check: exercises a multi-tile (2,2,2) grid, the K-reduction
    # accumulator, padding, and exp(W) cache reuse across batch tiles.
    M2, K2, N2 = 300, 640, 384
    x2 = jax.random.normal(k_x2, (M2, K2), dtype=jnp.float32)
    w2 = xavier_uniform(k_w2, N2, K2)
    y2 = jax.block_until_ready(positive_linear(x2, w2))
    y2_ref = x2 @ jnp.exp(w2).T
    err2 = jnp.max(jnp.abs(y2 - y2_ref)) / (jnp.max(jnp.abs(y2_ref)) + 1e-6)
    assert err2 < 2e-2, f"tiled-shape mismatch: rel err {err2}"

    print("KERNEL_OK")
</pallas_src>

<mosaic_0001>
module attributes {stable_mosaic.version = 11 : i64} {
  func.func @_positive_linear_kernel(%arg0: i32, %arg1: i32, %arg2: i32, %arg3: memref<8x128xf32, #tpu.memory_space<vmem>>, %arg4: memref<128x128xf32, #tpu.memory_space<vmem>>, %arg5: memref<8x128xf32, #tpu.memory_space<vmem>>, %arg6: memref<8x128xf32, #tpu.memory_space<vmem>>, %arg7: memref<128x128xbf16, #tpu.memory_space<vmem>>) attributes {dimension_semantics = [#tpu.dimension_semantics<parallel>, #tpu.dimension_semantics<arbitrary>, #tpu.dimension_semantics<arbitrary>], iteration_bounds = array<i64: 1, 1, 1>, scalar_prefetch = 0 : i64, scratch_operands = 2 : i64, tpu.core_type = #tpu.core_type<tc>, window_params = [{transform_indices = @transform_0, window_bounds = array<i64: 8, 128>}, {transform_indices = @transform_1, window_bounds = array<i64: 128, 128>}, {transform_indices = @transform_2, window_bounds = array<i64: 8, 128>}]} {
    %c0_i32 = arith.constant 0 : i32
    %0 = arith.cmpi eq, %arg2, %c0_i32 : i32
    %1 = arith.extui %0 : i1 to i32
    %c0_i32_0 = arith.constant 0 : i32
    %2 = arith.cmpi ne, %1, %c0_i32_0 : i32
    scf.if %2 {
      %cst_11 = arith.constant 0.000000e+00 : f32
      %19 = vector.broadcast %cst_11 : f32 to vector<8x128xf32>
      %c0_12 = arith.constant 0 : index
      %c0_13 = arith.constant 0 : index
      %20 = vector.load %arg6[%c0_12, %c0_13] : memref<8x128xf32, #tpu.memory_space<vmem>>, vector<8x128xf32>
      tpu.vector_store %arg6[%c0_12, %c0_13], %19 {strides = array<i32>} : memref<8x128xf32, #tpu.memory_space<vmem>>, vector<8x128xf32>,
    } else {
    }
    %c128_i32 = arith.constant 128 : i32
    %3 = arith.muli %arg2, %c128_i32 : i32
    %4 = tpu.assume_multiple %3, 128 : i32
    %c0_i32_1 = arith.constant 0 : i32
    %5 = arith.cmpi eq, %arg1, %c0_i32_1 : i32
    %6 = arith.extui %5 : i1 to i32
    %c0_i32_2 = arith.constant 0 : i32
    %7 = arith.cmpi ne, %6, %c0_i32_2 : i32
    scf.if %7 {
      %c0_11 = arith.constant 0 : index
      %c0_12 = arith.constant 0 : index
      %19 = vector.load %arg4[%c0_11, %c0_12] : memref<128x128xf32, #tpu.memory_space<vmem>>, vector<128x128xf32>
      %20 = math.exp %19 : vector<128x128xf32>
      %21 = arith.truncf %20 : vector<128x128xf32> to vector<128x128xbf16>
      %22 = arith.index_cast %4 : i32 to index
      %c0_13 = arith.constant 0 : index
      %23 = vector.load %arg7[%22, %c0_13] : memref<128x128xbf16, #tpu.memory_space<vmem>>, vector<128x128xbf16>
      tpu.vector_store %arg7[%22, %c0_13], %21 {strides = array<i32>} : memref<128x128xbf16, #tpu.memory_space<vmem>>, vector<128x128xbf16>,
    } else {
    }
    %c0 = arith.constant 0 : index
    %c0_3 = arith.constant 0 : index
    %8 = vector.load %arg3[%c0, %c0_3] : memref<8x128xf32, #tpu.memory_space<vmem>>, vector<8x128xf32>
    %9 = arith.truncf %8 : vector<8x128xf32> to vector<8x128xbf16>
    %10 = arith.index_cast %4 : i32 to index
    %c0_4 = arith.constant 0 : index
    %11 = vector.load %arg7[%10, %c0_4] : memref<128x128xbf16, #tpu.memory_space<vmem>>, vector<128x128xbf16>
    %c0_5 = arith.constant 0 : index
    %c0_6 = arith.constant 0 : index
    %12 = vector.load %arg6[%c0_5, %c0_6] : memref<8x128xf32, #tpu.memory_space<vmem>>, vector<8x128xf32>
    %cst = arith.constant dense<0.000000e+00> : vector<8x128xf32>
    %13 = tpu.matmul %9, %11, %cst {dimension_numbers = #tpu.dot_dimension_numbers<[1], [0], [0], [1], [0, 0, 1, 1], [], []>} : vector<8x128xbf16>, vector<128x128xbf16>, vector<8x128xf32> -> vector<8x128xf32>
    %14 = arith.addf %12, %13 : vector<8x128xf32>
    %c0_7 = arith.constant 0 : index
    %c0_8 = arith.constant 0 : index
    %15 = vector.load %arg6[%c0_7, %c0_8] : memref<8x128xf32, #tpu.memory_space<vmem>>, vector<8x128xf32>
    tpu.vector_store %arg6[%c0_7, %c0_8], %14 {strides = array<i32>} : memref<8x128xf32, #tpu.memory_space<vmem>>, vector<8x128xf32>,
    %c0_i32_9 = arith.constant 0 : i32
    %16 = arith.cmpi eq, %arg2, %c0_i32_9 : i32
    %17 = arith.extui %16 : i1 to i32
    %c0_i32_10 = arith.constant 0 : i32
    %18 = arith.cmpi ne, %17, %c0_i32_10 : i32
    scf.if %18 {
      %c0_11 = arith.constant 0 : index
      %c0_12 = arith.constant 0 : index
      %19 = vector.load %arg6[%c0_11, %c0_12] : memref<8x128xf32, #tpu.memory_space<vmem>>, vector<8x128xf32>
      %c0_13 = arith.constant 0 : index
      %c0_14 = arith.constant 0 : index
      %20 = vector.load %arg5[%c0_13, %c0_14] : memref<8x128xf32, #tpu.memory_space<vmem>>, vector<8x128xf32>
      tpu.vector_store %arg5[%c0_13, %c0_14], %19 {strides = array<i32>} : memref<8x128xf32, #tpu.memory_space<vmem>>, vector<8x128xf32>,
    } else {
    }
    return
  }
  func.func @transform_0(%arg0: i32, %arg1: i32, %arg2: i32) -> (i32, i32) {
    %c0_i32 = arith.constant 0 : i32
    return %arg1, %arg2 : i32, i32
  }
  func.func @transform_1(%arg0: i32, %arg1: i32, %arg2: i32) -> (i32, i32) {
    %c0_i32 = arith.constant 0 : i32
    return %arg2, %arg0 : i32, i32
  }
  func.func @transform_2(%arg0: i32, %arg1: i32, %arg2: i32) -> (i32, i32) {
    %c0_i32 = arith.constant 0 : i32
    return %arg1, %arg0 : i32, i32
  }
}

</mosaic_0001>

<bundles_post_ra>
// kernel: tpu_custom_call.1
= control target key start
LH: loop header
LB: loop body
LE: loop exit
PB: predicated region body
PF: predicated region fallthrough
CT: control target
= control target key end

     0   :  { %7 = vsyncpa [#allocation5], 0  ;;  %s588_s0 = inlined_call_operand.hbm [shape: f32[8,128], index: 0, kind: input, shape index: {}]   ;;  %s589_s1 = inlined_call_operand.hbm [shape: f32[128,128], index: 1, kind: input, shape index: {}]   ;;  %s590_s2 = inlined_call_operand.hbm [shape: f32[8,128], index: 2, kind: output, shape index: {}]  }
   0x1   :  { %8 = vsyncpa [#allocation8], 0 }
   0x2   :  { %9 = vsyncpa [#allocation6], 0  ;;  %s548_s9 = smov [#allocation4]   ;;  %s549_s11 = smov [#allocation7]  }
   0x3   :  { %s16_s10 = sshll.u32 %s548_s9, 4  ;;  %s25_s12 = sshll.u32 %s549_s11, 4  ;;  %s17_s10 = int_to_ptr.vmem [resolvable:$true] %s16_s10  ;;  %s26_s12 = int_to_ptr.vmem [resolvable:$true] %s25_s12 }
   0x4   :  { %s490_s13 = scalar_lea.vmem %s17_s10, 128  ;;  %p495_p1 = scmp.lt.s32.totalorder %s17_s10, %s17_s10 }
   0x5   :  { %p491_p0 = scmp.ne.s32.totalorder %s17_s10, %s490_s13  ;;  %p496_p2 = scmp.lt.s32.totalorder %s490_s13, %s490_s13 }
   0x7   :  { %p497_p3 = por %p496_p2, %p495_p1 }
   0x9   :  { %p498_p4 = pnand %p497_p3, %p491_p0 }
   0xb   :  { %501 = shalt.err (!%p498_p4)
}
   0xc   :  { %19 = dma.hbm_to_vmem [thread:$0]  %s588_s0, 128, %s17_s10, [#allocation5]  }
   0xd   :  { %s510_s16 = scalar_lea.vmem %s26_s12, 2048  ;;  %p515_p6 = scmp.lt.s32.totalorder %s26_s12, %s26_s12 }
   0xe   :  { %p511_p5 = scmp.ne.s32.totalorder %s26_s12, %s510_s16  ;;  %p516_p7 = scmp.lt.s32.totalorder %s510_s16, %s510_s16 }
  0x10   :  { %p517_p8 = por %p516_p7, %p515_p6 }
  0x12   :  { %p518_p9 = pnand %p517_p8, %p511_p5 }
  0x14   :  { %521 = shalt.err (!%p518_p9)
}
  0x15   :  { %s550_s17 = smov 128   ;;  %s551_s18 = smov 8  }
  0x16   :  { %31 = dma.hbm_to_vmem [thread:$0]  %s589_s1, 2048, %s26_s12, [#allocation8], %s550_s17, %s550_s17, %s551_s18  }
  0x17   :  { %542 = dma.done.wait [#allocation5], 128  }
  0x18   :  { %543 = vsyncadd [#allocation5], 4294967168 }
  0x19   :  { %544 = dma.done.wait [#allocation8], 2048  }
  0x1a   :  { %545 = vsyncadd [#allocation8], 4294965248  ;;  %v552_v0 = vmov 0.0   ;;  %vm553_vm0 = vmmov 0   ;;  %v63_v1 = vld [vmem:[#allocation7 + $0x70] sm:$0xff]  ;;  %v64_v2 = vld [vmem:[#allocation7 + $0x78] sm:$0xff] }
  0x1b   :  { %415 = vmatprep.subr.bf16.mxu0 %v552_v0  ;;  %431 = vmatprep.mubr.msk.bf16.mxu0 %vm553_vm0, %v552_v0  ;;  %v61_v3 = vld [vmem:[#allocation7 + $0x60] sm:$0xff]  ;;  %v93_v4 = vmul.f32 1.442695, %v63_v1  ;;  %v95_v5 = vmul.f32 1.442695, %v64_v2  ;;  %v62_v6 = vld [vmem:[#allocation7 + $0x68] sm:$0xff] }
  0x1c   :  { %v59_v7 = vld [vmem:[#allocation7 + $0x50] sm:$0xff]  ;;  %v89_v8 = vmul.f32 1.442695, %v61_v3  ;;  %v91_v9 = vmul.f32 1.442695, %v62_v6  ;;  %v60_v10 = vld [vmem:[#allocation7 + $0x58] sm:$0xff] }
  0x1d   :  { %v57_v11 = vld [vmem:[#allocation7 + $0x40] sm:$0xff]  ;;  %450 = vpow2.f32 %v93_v4  ;;  %v85_v12 = vmul.f32 1.442695, %v59_v7  ;;  %v58_v13 = vld [vmem:[#allocation7 + $0x48] sm:$0xff]  ;;  %v87_v14 = vmul.f32 1.442695, %v60_v10 }
  0x1e   :  { %452 = vpow2.f32 %v95_v5  ;;  %v55_v15 = vld [vmem:[#allocation7 + $0x30] sm:$0xff]  ;;  %v81_v16 = vmul.f32 1.442695, %v57_v11  ;;  %v56_v17 = vld [vmem:[#allocation7 + $0x38] sm:$0xff]  ;;  %v83_v18 = vmul.f32 1.442695, %v58_v13 }
  0x1f   :  { %454 = vpow2.f32 %v89_v8  ;;  %v53_v19 = vld [vmem:[#allocation7 + $0x20] sm:$0xff]  ;;  %v77_v20 = vmul.f32 1.442695, %v55_v15  ;;  %v54_v21 = vld [vmem:[#allocation7 + $0x28] sm:$0xff]  ;;  %v79_v22 = vmul.f32 1.442695, %v56_v17 }
  0x20   :  { %456 = vpow2.f32 %v91_v9  ;;  %v51_v23 = vld [vmem:[#allocation7 + $0x10] sm:$0xff]  ;;  %v73_v24 = vmul.f32 1.442695, %v53_v19  ;;  %v52_v25 = vld [vmem:[#allocation7 + $0x18] sm:$0xff]  ;;  %v75_v26 = vmul.f32 1.442695, %v54_v21 }
  0x21   :  { %458 = vpow2.f32 %v85_v12  ;;  %v49_v27 = vld [vmem:[#allocation7] sm:$0xff]  ;;  %v69_v28 = vmul.f32 1.442695, %v51_v23  ;;  %v50_v29 = vld [vmem:[#allocation7 + $0x8] sm:$0xff]  ;;  %v71_v30 = vmul.f32 1.442695, %v52_v25 }
  0x22   :  { %460 = vpow2.f32 %v87_v14  ;;  %v65_v31 = vmul.f32 1.442695, %v49_v27  ;;  %v67_v32 = vmul.f32 1.442695, %v50_v29  ;;  %v181_v2 = vld [vmem:[#allocation4] sm:$0xff]  ;;  %s554_s0 = smov [#allocation9]  }
  0x23   :  { %462 = vpow2.f32 %v81_v16  ;;  %v182_v3 = vpack.c.bf16 %v181_v2, %v181_v2  ;;  %s305_s1 = sshll.u32 %s554_s0, 4  ;;  %s306_s1 = int_to_ptr.vmem [resolvable:$true] %s305_s1 }
  0x24   :  { %464 = vpow2.f32 %v83_v18  ;;  %s522_s21 = scalar_lea.vmem %s306_s1, 128  ;;  %p527_p11 = scmp.lt.s32.totalorder %s306_s1, %s306_s1 }
  0x25   :  { %466 = vpow2.f32 %v77_v20  ;;  %p523_p10 = scmp.ne.s32.totalorder %s306_s1, %s522_s21  ;;  %p528_p12 = scmp.lt.s32.totalorder %s522_s21, %s522_s21 }
  0x26   :  { %468 = vpow2.f32 %v79_v22 }
  0x27   :  { %470 = vpow2.f32 %v73_v24  ;;  %p529_p13 = por %p528_p12, %p527_p11 }
  0x28   :  { %472 = vpow2.f32 %v75_v26 }
  0x29   :  { %474 = vpow2.f32 %v69_v28  ;;  %p530_p0 = pnand %p529_p13, %p523_p10 }
  0x2a   :  { %v451_v33 = vpop.eup %450  ;;  %476 = vpow2.f32 %v71_v30 }
  0x2b   :  { %v453_v34 = vpop.eup %452  ;;  %478 = vpow2.f32 %v65_v31 }
  0x2c   :  { %v455_v35 = vpop.eup %454  ;;  %v397_v36 = vpack.c.bf16 %v453_v34, %v451_v33  ;;  %480 = vpow2.f32 %v67_v32 }
  0x2d   :  { %v457_v37 = vpop.eup %456 }
  0x2e   :  { %v459_v38 = vpop.eup %458  ;;  %405 = vst [vmem:[#allocation3 + $0x38] sm:$0xff] %v397_v36   ;;  %v392_v39 = vpack.c.bf16 %v457_v37, %v455_v35 }
  0x2f   :  { %v461_v40 = vpop.eup %460 }
  0x30   :  { %v463_v41 = vpop.eup %462  ;;  %404 = vst [vmem:[#allocation3 + $0x30] sm:$0xff] %v392_v39   ;;  %v387_v42 = vpack.c.bf16 %v461_v40, %v459_v38 }
  0x31   :  { %v465_v43 = vpop.eup %464 }
  0x32   :  { %v467_v44 = vpop.eup %466  ;;  %403 = vst [vmem:[#allocation3 + $0x28] sm:$0xff] %v387_v42   ;;  %v382_v45 = vpack.c.bf16 %v465_v43, %v463_v41 }
  0x33   :  { %v469_v46 = vpop.eup %468 }
  0x34   :  { %v471_v47 = vpop.eup %470  ;;  %402 = vst [vmem:[#allocation3 + $0x20] sm:$0xff] %v382_v45   ;;  %v377_v48 = vpack.c.bf16 %v469_v46, %v467_v44 }
  0x35   :  { %v473_v49 = vpop.eup %472  ;;  %v442_v50 = vld [vmem:[#allocation3 + $0x38] sm:$0xff]  }
  0x36   :  { %v475_v51 = vpop.eup %474  ;;  %401 = vst [vmem:[#allocation3 + $0x18] sm:$0xff] %v377_v48   ;;  %v372_v52 = vpack.c.bf16 %v473_v49, %v471_v47  ;;  %416 = vmatpush3.bf16.msra.mxu0 %v442_v50 }
  0x37   :  { %v477_v53 = vpop.eup %476  ;;  %v443_v54 = vld [vmem:[#allocation3 + $0x30] sm:$0xff]   ;;  %417 = vmatprep.subr.bf16.mxu0 %v552_v0 }
  0x38   :  { %v479_v55 = vpop.eup %478  ;;  %400 = vst [vmem:[#allocation3 + $0x10] sm:$0xff] %v372_v52   ;;  %v367_v56 = vpack.c.bf16 %v477_v53, %v475_v51 }
  0x39   :  { %v481_v57 = vpop.eup %480  ;;  %v444_v59 = vld [vmem:[#allocation3 + $0x28] sm:$0xff]  }
  0x3a   :  { %399 = vst [vmem:[#allocation3 + $0x8] sm:$0xff] %v367_v56   ;;  %v362_v58 = vpack.c.bf16 %v481_v57, %v479_v55  ;;  %418 = vmatpush3.bf16.msra.mxu0 %v443_v54 }
  0x3b   :  { %419 = vmatprep.subr.bf16.mxu0 %v552_v0  ;;  %v445_v60 = vld [vmem:[#allocation3 + $0x20] sm:$0xff]  }
  0x3c   :  { %363 = vst [vmem:[#allocation3] sm:$0xff] %v362_v58  }
  0x3d   :  { %v446_v61 = vld [vmem:[#allocation3 + $0x18] sm:$0xff]  }
  0x3e   :  { %420 = vmatpush3.bf16.msra.mxu0 %v444_v59 }
  0x3f   :  { %421 = vmatprep.subr.bf16.mxu0 %v552_v0  ;;  %v447_v62 = vld [vmem:[#allocation3 + $0x10] sm:$0xff]  }
  0x41   :  { %v448_v63 = vld [vmem:[#allocation3 + $0x8] sm:$0xff]  }
  0x42   :  { %422 = vmatpush3.bf16.msra.mxu0 %v445_v60 }
  0x43   :  { %423 = vmatprep.subr.bf16.mxu0 %v552_v0  ;;  %v449_v1 = vld [vmem:[#allocation3] sm:$0xff]  }
  0x46   :  { %424 = vmatpush3.bf16.msra.mxu0 %v446_v61 }
  0x47   :  { %425 = vmatprep.subr.bf16.mxu0 %v552_v0 }
  0x4a   :  { %426 = vmatpush3.bf16.msra.mxu0 %v447_v62 }
  0x4b   :  { %427 = vmatprep.subr.bf16.mxu0 %v552_v0 }
  0x4e   :  { %428 = vmatpush3.bf16.msra.mxu0 %v448_v63 }
  0x4f   :  { %429 = vmatprep.subr.bf16.mxu0 %v552_v0 }
  0x52   :  { %430 = vmatpush3.bf16.msra.mxu0 %v449_v1 }
  0x55   :  { %432 = vmatmul.mubr.bf16.vlgmr.msra.gmra.mxu0 %v182_v3 }
 0x115   :  { %v286_v4 = vpop.f32.mrf.mxu0 }
 0x116   :  { %298 = vst [vmem:[#allocation9] sm:$0xff] %v286_v4 }
 0x117   :  { %v433_v5 = vpop.f32.mrf.mxu0 }
 0x118   :  { %533 = shalt.err (!%p530_p0)
}
 0x119   :  { %308 = dma.vmem_to_hbm [thread:$0]  %s306_s1, 128, %s590_s2, [#allocation6]   ;;  %v289_v0 = vpop.f32.mrf.mxu0 }
 0x11b   :  { %v434_v6 = vpop.f32.mrf.mxu0 }
 0x11c   :  { %546 = dma.done.wait [#allocation6], 128  }
 0x11d   :  { %547 = vsyncadd [#allocation6], 4294967168 }
 0x11e   :  { %312 = vsyncpa [#allocation5], 1 }
 0x11f   :  { %313 = vsyncpa [#allocation8], 1 }
 0x120   :  { %314 = vsyncpa [#allocation6], 1 }

</bundles_post_ra>
